<compile_context>
chip_gen: v5e
topology: v5e:2x2
jax: 0.10.0
libtpu: 0.0.40
codegen_flags: <defaults>
</compile_context>

<pallas_src>
import functools

import jax
import jax.numpy as jnp
from jax import lax
from jax.experimental import pallas as pl
from jax.experimental.pallas import tpu as pltpu

EPS = 1e-8


def temporal_block_kernel(seg_ref, segT_ref, tmod_ref, x_ref,
                          w1_ref, a1_ref, g1_ref, b1_ref,
                          wdw_ref, a2_ref, g2_ref, b2_ref, w2_ref,
                          out_ref, *, kernel_size, dilation, padding,
                          k_len, m_tile, matmul_dtype):
    K = k_len
    Mt = m_tile
    TOT = Mt * K                      # m_tile samples concatenated on the lane axis

    def mxu(a, b):
        # Feed the MXU bf16 (native path on v5e/v6e/v7x); accumulate in f32.
        if matmul_dtype is not None:
            a = a.astype(matmul_dtype)
            b = b.astype(matmul_dtype)
        return jnp.dot(a, b, preferred_element_type=jnp.float32)

    # ---- hoisted loop-invariant helpers (DMA'd once, constant index_map) -----
    seg = seg_ref[...]                # (Mt, TOT) per-sample indicator rows
    segT = segT_ref[...]              # (TOT, Mt)
    tmod = tmod_ref[...]              # (1, TOT) int32: time index within sample

    inv_n = 1.0 / float(w1_ref.shape[0] * K)

    def gln(v, g, b):
        # single-pass gLN; sum and sum-of-squares packed into one operand so the
        # per-sample reduce / broadcast each cost a single tiny MXU push.
        col = jnp.concatenate(
            [jnp.sum(v, axis=0, keepdims=True),
             jnp.sum(v * v, axis=0, keepdims=True)], axis=0)              # (2, TOT)
        red = jnp.dot(col, segT, preferred_element_type=jnp.float32)      # (2, Mt)
        mean = red[0:1] * inv_n
        var = jnp.maximum(red[1:2] * inv_n - mean * mean, 0.0)            # no NaN
        inv = lax.rsqrt(var + EPS)                                        # EUP
        stats = jnp.concatenate([mean, inv], axis=0)                      # (2, Mt)
        rows = jnp.dot(stats, seg, preferred_element_type=jnp.float32)    # (2, TOT)
        return g * ((v - rows[0:1]) * rows[1:2]) + b

    # ---- 1x1 conv (B->H): lane-dense MXU matmul, N = Mt*K --------------------
    y = mxu(w1_ref[...], x_ref[...])                                      # (H, TOT)
    a1 = a1_ref[0]
    y = jnp.where(y >= 0.0, y, a1 * y)                                    # PReLU
    y = gln(y, g1_ref[...], b1_ref[...])                                  # gLN

    # ---- depthwise conv: lane rolls (XLU) + per-sample edge masks ------------
    # TODO(synk): optionally keep y/acc in bf16 between the f32 gLN stats on
    # v6e/v7x (halves VALU / vreg cost); kept f32 here for v5e and tight checks.
    wdw = wdw_ref[...]                                                    # (H, P)
    acc = None
    for p in range(kernel_size):                                          # tiny static loop
        sp = p * dilation - padding                                       # time shift of tap p
        if sp == 0:
            contrib = wdw[:, p:p + 1] * y
        else:
            shifted = pltpu.roll(y, shift=(-sp) % TOT, axis=1)            # shifted[c] = y[c+sp]
            valid = (tmod >= -sp) & (tmod < K - sp)                       # per-sample edges
            contrib = jnp.where(valid, wdw[:, p:p + 1] * shifted, 0.0)
        acc = contrib if acc is None else acc + contrib                   # first tap = init

    a2 = a2_ref[0]
    acc = jnp.where(acc >= 0.0, acc, a2 * acc)                            # PReLU
    acc = gln(acc, g2_ref[...], b2_ref[...])                              # gLN

    # ---- pointwise conv (H->B) + residual (re-read x from VMEM block) --------
    z = mxu(w2_ref[...], acc)                                             # (B, TOT)
    out_ref[...] = (z + x_ref[...]).astype(out_ref.dtype)


def _vmem_capacity_bytes():
    # Trace-time hardware query; conservative fallback = v7x per-TC VMEM.
    try:
        return int(pltpu.get_tpu_info().vmem_capacity_bytes)
    except Exception:
        return 64 * 1024 * 1024


def temporal_block(x, params, *, kernel_size, dilation, padding,
                   m_tile=None, matmul_dtype="auto"):
    M, B, K = x.shape
    H = params["w1"].shape[0]
    P = kernel_size
    # TODO(synk): add a halo'd time-tile grid axis (+ two-pass gLN stats scratch)
    # so very long / non-128-multiple K is supported; whole-K blocks here.
    assert K % 128 == 0, "time length must be a multiple of 128 for this kernel"

    if matmul_dtype == "auto":
        # v5e/v6e/v7x all have a native bf16 MXU; f32 matmuls are emulated.
        matmul_dtype = jnp.bfloat16

    # -------- generation-aware VMEM budget -> samples-per-step (mt) -----------
    vmem_cap = _vmem_capacity_bytes()
    budget = int(vmem_cap * 0.75)          # ~48 MiB on v7x, ~96 MiB on v5e/v6e

    def footprint(mt):
        tot = mt * K
        io = 2 * 2 * B * tot * 4                         # double-buffered x + out
        masks = 2 * (2 * mt + 1) * tot * 4               # seg + segT + tmod
        act = 5 * H * tot * 4                            # y / shifted / acc / temps
        if matmul_dtype is not None:
            act += 2 * H * tot * 2                       # bf16 copies fed to MXU
        wts = 4 * H * (B + H + P + 8)
        return io + masks + act + wts

    if m_tile is None:
        # Largest mt that fits the per-generation budget, but keep >= 2 grid
        # steps so both v7x TensorCores get work under dimension_semantics.
        mt_cap = max(1, -(-M // 2))
        mt = 1
        for cand in range(min(M, mt_cap, 64), 0, -1):
            if footprint(cand) <= budget:
                mt = cand
                break
    else:
        mt = max(1, min(m_tile, M))

    Mp = pl.cdiv(M, mt) * mt
    tot = mt * K

    # Layout plumbing in XLA (outside the kernel): (M,B,K) -> (B, Mp*K) with mt
    # samples concatenated along the lane (time) axis; zero-pad extra samples
    # (padded samples are sliced off; gLN is per-sample so they don't leak).
    xt = jnp.transpose(x, (1, 0, 2))                                  # (B, M, K)
    if Mp != M:
        xt = jnp.pad(xt, ((0, 0), (0, Mp - M), (0, 0)))
    x2 = xt.reshape(B, Mp * K)

    # Hoisted loop-invariant per-sample segment indicators + within-sample time.
    lane = jnp.arange(tot, dtype=jnp.int32)
    seg = (lane[None, :] // K ==
           jnp.arange(mt, dtype=jnp.int32)[:, None]).astype(jnp.float32)   # (mt, tot)
    segT = seg.T                                                           # (tot, mt)
    tmod = (lane % K)[None, :]                                             # (1, tot) int32

    kern = functools.partial(temporal_block_kernel,
                             kernel_size=P, dilation=dilation, padding=padding,
                             k_len=K, m_tile=mt, matmul_dtype=matmul_dtype)

    def full_vmem(shp):
        nd = len(shp)
        return pl.BlockSpec(shp, lambda m, _nd=nd: (0,) * _nd)

    smem = pl.BlockSpec(memory_space=pltpu.MemorySpace.SMEM)

    out2 = pl.pallas_call(
        kern,
        out_shape=jax.ShapeDtypeStruct((B, Mp * K), x.dtype),
        grid=(Mp // mt,),
        in_specs=[
            full_vmem((mt, tot)),                       # seg   (constant, DMA'd once)
            full_vmem((tot, mt)),                       # segT
            full_vmem((1, tot)),                        # tmod
            pl.BlockSpec((B, tot), lambda m: (0, m)),   # x (residual), mt samples/step
            full_vmem(params["w1"].shape),              # (H, B)
            smem,                                       # a1 scalar (SMEM)
            full_vmem(params["g1"].shape),              # (H, 1)
            full_vmem(params["b1"].shape),              # (H, 1)
            full_vmem(params["wdw"].shape),             # (H, P)
            smem,                                       # a2 scalar (SMEM)
            full_vmem(params["g2"].shape),              # (H, 1)
            full_vmem(params["b2"].shape),              # (H, 1)
            full_vmem(params["w2"].shape),              # (B, H)
        ],
        out_specs=pl.BlockSpec((B, tot), lambda m: (0, m)),
        compiler_params=pltpu.CompilerParams(
            dimension_semantics=("parallel",),          # batch axis is independent
            vmem_limit_bytes=budget),
    )(seg, segT, tmod, x2,
      params["w1"], params["a1"], params["g1"], params["b1"],
      params["wdw"], params["a2"], params["g2"], params["b2"], params["w2"])

    out = out2.reshape(B, Mp, K)[:, :M].transpose(1, 0, 2)            # back to (M, B, K)
    # feat_loc == 'residual' (-1): feature is the residual-added output itself.
    return out, out


def temporal_block_ref(x, params, *, kernel_size, dilation, padding):
    """Pure-JAX reference, mirrors the PyTorch forward (two-pass gLN)."""
    hp = lax.Precision.HIGHEST

    def gln(y, g, b):
        mean = jnp.mean(y, axis=(1, 2), keepdims=True)
        var = jnp.mean((y - mean) ** 2, axis=(1, 2), keepdims=True)
        return g[None] * (y - mean) / jnp.sqrt(var + EPS) + b[None]

    K = x.shape[-1]
    y = jnp.einsum("hb,mbk->mhk", params["w1"], x, precision=hp)
    y = jnp.where(y >= 0, y, params["a1"][0] * y)
    y = gln(y, params["g1"], params["b1"])
    yp = jnp.pad(y, ((0, 0), (0, 0), (padding, padding)))
    acc = jnp.zeros_like(y)
    for p in range(kernel_size):
        acc = acc + params["wdw"][None, :, p:p + 1] * \
            yp[:, :, p * dilation:p * dilation + K]
    acc = jnp.where(acc >= 0, acc, params["a2"][0] * acc)
    acc = gln(acc, params["g2"], params["b2"])
    z = jnp.einsum("bh,mhk->mbk", params["w2"], acc, precision=hp)
    ret = z + x
    return ret, ret


if __name__ == "__main__":
    # Small shapes consistent with the module: x [M, B, K] (batch, channels, time)
    M, B, H, K = 4, 8, 16, 128
    P, dilation = 3, 2
    padding = (P - 1) * dilation // 2     # 'same' length (non-causal)

    key = jax.random.PRNGKey(0)
    ks = jax.random.split(key, 8)
    params = {
        "w1":  0.1 * jax.random.normal(ks[0], (H, B), jnp.float32),   # conv1x1 weight
        "a1":  jnp.full((1,), 0.25, jnp.float32),                     # PReLU alpha
        "g1":  1.0 + 0.05 * jax.random.normal(ks[1], (H, 1), jnp.float32),
        "b1":  0.05 * jax.random.normal(ks[2], (H, 1), jnp.float32),
        "wdw": 0.1 * jax.random.normal(ks[3], (H, P), jnp.float32),   # depthwise weight
        "a2":  jnp.full((1,), 0.25, jnp.float32),                     # PReLU alpha
        "g2":  1.0 + 0.05 * jax.random.normal(ks[4], (H, 1), jnp.float32),
        "b2":  0.05 * jax.random.normal(ks[5], (H, 1), jnp.float32),
        "w2":  0.1 * jax.random.normal(ks[6], (B, H), jnp.float32),   # pointwise weight
    }
    x = jax.random.normal(ks[7], (M, B, K), jnp.float32)

    # TODO(synk): dropout (F.dropout before dsconv) is inactive here (p=0.0 / eval).
    ret_ref, feat_ref = temporal_block_ref(x, params, kernel_size=P,
                                           dilation=dilation, padding=padding)

    # Production path: bf16 MXU by default, mt picked from the per-generation
    # VMEM budget (keeps >= 2 grid steps for v7x megacore).
    ret_bf, feat_bf = temporal_block(x, params, kernel_size=P, dilation=dilation,
                                     padding=padding)
    ret_bf = jax.block_until_ready(ret_bf)
    feat_bf = jax.block_until_ready(feat_bf)
    assert ret_bf.shape == (M, B, K) and feat_bf.shape == (M, B, K)
    assert float(jnp.max(jnp.abs(ret_bf - ret_ref))) < 1e-1          # bf16 MXU tolerance

    # f32 MXU path: tight numerical check against the pure-JAX reference.
    ret32, feat32 = temporal_block(x, params, kernel_size=P, dilation=dilation,
                                   padding=padding, matmul_dtype=None)
    ret32 = jax.block_until_ready(ret32)
    feat32 = jax.block_until_ready(feat32)
    assert ret32.shape == (M, B, K) and feat32.shape == (M, B, K)
    assert jnp.allclose(ret32, ret_ref, atol=1e-4, rtol=1e-4)
    assert jnp.allclose(feat32, feat_ref, atol=1e-4, rtol=1e-4)

    print("KERNEL_OK")
</pallas_src>

<mosaic_0001>
module attributes {stable_mosaic.version = 11 : i64} {
  func.func @temporal_block_kernel(%arg0: i32, %arg1: memref<2x256xf32, #tpu.memory_space<vmem>>, %arg2: memref<256x2xf32, #tpu.memory_space<vmem>>, %arg3: memref<1x256xi32, #tpu.memory_space<vmem>>, %arg4: memref<8x256xf32, #tpu.memory_space<vmem>>, %arg5: memref<16x8xf32, #tpu.memory_space<vmem>>, %arg6: memref<1xf32, #tpu.memory_space<smem>>, %arg7: memref<16x1xf32, #tpu.memory_space<vmem>>, %arg8: memref<16x1xf32, #tpu.memory_space<vmem>>, %arg9: memref<16x3xf32, #tpu.memory_space<vmem>>, %arg10: memref<1xf32, #tpu.memory_space<smem>>, %arg11: memref<16x1xf32, #tpu.memory_space<vmem>>, %arg12: memref<16x1xf32, #tpu.memory_space<vmem>>, %arg13: memref<8x16xf32, #tpu.memory_space<vmem>>, %arg14: memref<8x256xf32, #tpu.memory_space<vmem>>) attributes {dimension_semantics = [#tpu.dimension_semantics<parallel>], iteration_bounds = array<i64: 2>, scalar_prefetch = 0 : i64, scratch_operands = 0 : i64, tpu.core_type = #tpu.core_type<tc>, window_params = [{pipeline_mode = #tpu.pipeline_mode<synchronous>, transform_indices = @transform_0, window_bounds = array<i64: 2, 256>}, {pipeline_mode = #tpu.pipeline_mode<synchronous>, transform_indices = @transform_1, window_bounds = array<i64: 256, 2>}, {pipeline_mode = #tpu.pipeline_mode<synchronous>, transform_indices = @transform_2, window_bounds = array<i64: 1, 256>}, {transform_indices = @transform_3, window_bounds = array<i64: 8, 256>}, {pipeline_mode = #tpu.pipeline_mode<synchronous>, transform_indices = @transform_4, window_bounds = array<i64: 16, 8>}, {transform_indices = @transform_5, window_bounds = array<i64: 1>}, {pipeline_mode = #tpu.pipeline_mode<synchronous>, transform_indices = @transform_6, window_bounds = array<i64: 16, 1>}, {pipeline_mode = #tpu.pipeline_mode<synchronous>, transform_indices = @transform_7, window_bounds = array<i64: 16, 1>}, {pipeline_mode = #tpu.pipeline_mode<synchronous>, transform_indices = @transform_8, window_bounds = array<i64: 16, 3>}, {transform_indices = @transform_9, window_bounds = array<i64: 1>}, {pipeline_mode = #tpu.pipeline_mode<synchronous>, transform_indices = @transform_10, window_bounds = array<i64: 16, 1>}, {pipeline_mode = #tpu.pipeline_mode<synchronous>, transform_indices = @transform_11, window_bounds = array<i64: 16, 1>}, {pipeline_mode = #tpu.pipeline_mode<synchronous>, transform_indices = @transform_12, window_bounds = array<i64: 8, 16>}, {transform_indices = @transform_13, window_bounds = array<i64: 8, 256>}]} {
    %c0 = arith.constant 0 : index
    %c0_0 = arith.constant 0 : index
    %0 = vector.load %arg1[%c0, %c0_0] : memref<2x256xf32, #tpu.memory_space<vmem>>, vector<2x256xf32>
    %c0_1 = arith.constant 0 : index
    %c0_2 = arith.constant 0 : index
    %1 = vector.load %arg2[%c0_1, %c0_2] : memref<256x2xf32, #tpu.memory_space<vmem>>, vector<256x2xf32>
    %c0_3 = arith.constant 0 : index
    %c0_4 = arith.constant 0 : index
    %2 = vector.load %arg3[%c0_3, %c0_4] : memref<1x256xi32, #tpu.memory_space<vmem>>, vector<1x256xi32>
    %c0_5 = arith.constant 0 : index
    %c0_6 = arith.constant 0 : index
    %3 = vector.load %arg5[%c0_5, %c0_6] : memref<16x8xf32, #tpu.memory_space<vmem>>, vector<16x8xf32>
    %c0_7 = arith.constant 0 : index
    %c0_8 = arith.constant 0 : index
    %4 = vector.load %arg4[%c0_7, %c0_8] : memref<8x256xf32, #tpu.memory_space<vmem>>, vector<8x256xf32>
    %5 = arith.truncf %3 : vector<16x8xf32> to vector<16x8xbf16>
    %6 = arith.truncf %4 : vector<8x256xf32> to vector<8x256xbf16>
    %cst = arith.constant dense<0.000000e+00> : vector<16x256xf32>
    %7 = tpu.matmul %5, %6, %cst {dimension_numbers = #tpu.dot_dimension_numbers<[1], [0], [0], [1], [0, 0, 1, 1], [], []>} : vector<16x8xbf16>, vector<8x256xbf16>, vector<16x256xf32> -> vector<16x256xf32>
    %c0_9 = arith.constant 0 : index
    %8 = memref.load %arg6[%c0_9] : memref<1xf32, #tpu.memory_space<smem>>
    %cst_10 = arith.constant 0.000000e+00 : f32
    %9 = vector.broadcast %cst_10 : f32 to vector<16x256xf32>
    %10 = arith.cmpf oge, %7, %9 : vector<16x256xf32>
    %11 = vector.broadcast %8 : f32 to vector<16x256xf32>
    %12 = arith.mulf %11, %7 : vector<16x256xf32>
    %13 = arith.select %10, %7, %12 : vector<16x256xi1>, vector<16x256xf32>
    %c0_11 = arith.constant 0 : index
    %c0_12 = arith.constant 0 : index
    %14 = vector.load %arg7[%c0_11, %c0_12] : memref<16x1xf32, #tpu.memory_space<vmem>>, vector<16x1xf32>
    %c0_13 = arith.constant 0 : index
    %c0_14 = arith.constant 0 : index
    %15 = vector.load %arg8[%c0_13, %c0_14] : memref<16x1xf32, #tpu.memory_space<vmem>>, vector<16x1xf32>
    %cst_15 = arith.constant dense<0.000000e+00> : vector<256xf32>
    %16 = vector.multi_reduction <add>, %13, %cst_15 [0] : vector<16x256xf32> to vector<256xf32>
    %17 = vector.shape_cast %16 : vector<256xf32> to vector<1x256xf32>
    %18 = arith.mulf %13, %13 : vector<16x256xf32>
    %cst_16 = arith.constant dense<0.000000e+00> : vector<256xf32>
    %19 = vector.multi_reduction <add>, %18, %cst_16 [0] : vector<16x256xf32> to vector<256xf32>
    %20 = vector.shape_cast %19 : vector<256xf32> to vector<1x256xf32>
    %21 = tpu.concatenate %17, %20 in 0 : vector<1x256xf32>, vector<1x256xf32> -> vector<2x256xf32>
    %cst_17 = arith.constant dense<0.000000e+00> : vector<2x2xf32>
    %22 = tpu.matmul %21, %1, %cst_17 {dimension_numbers = #tpu.dot_dimension_numbers<[1], [0], [0], [1], [0, 0, 1, 1], [], []>} : vector<2x256xf32>, vector<256x2xf32>, vector<2x2xf32> -> vector<2x2xf32>
    %23 = vector.extract_strided_slice %22 {offsets = [0, 0], sizes = [1, 2], strides = [1, 1]} : vector<2x2xf32> to vector<1x2xf32>
    %cst_18 = arith.constant 4.8828125E-4 : f32
    %24 = vector.broadcast %cst_18 : f32 to vector<1x2xf32>
    %25 = arith.mulf %23, %24 : vector<1x2xf32>
    %26 = vector.extract_strided_slice %22 {offsets = [1, 0], sizes = [1, 2], strides = [1, 1]} : vector<2x2xf32> to vector<1x2xf32>
    %cst_19 = arith.constant 4.8828125E-4 : f32
    %27 = vector.broadcast %cst_19 : f32 to vector<1x2xf32>
    %28 = arith.mulf %26, %27 : vector<1x2xf32>
    %29 = arith.mulf %25, %25 : vector<1x2xf32>
    %30 = arith.subf %28, %29 : vector<1x2xf32>
    %cst_20 = arith.constant 0.000000e+00 : f32
    %31 = vector.broadcast %cst_20 : f32 to vector<1x2xf32>
    %32 = arith.maximumf %30, %31 : vector<1x2xf32>
    %cst_21 = arith.constant 9.99999993E-9 : f32
    %33 = vector.broadcast %cst_21 : f32 to vector<1x2xf32>
    %34 = arith.addf %32, %33 : vector<1x2xf32>
    %35 = math.rsqrt %34 : vector<1x2xf32>
    %36 = tpu.concatenate %25, %35 in 0 : vector<1x2xf32>, vector<1x2xf32> -> vector<2x2xf32>
    %cst_22 = arith.constant dense<0.000000e+00> : vector<2x256xf32>
    %37 = tpu.matmul %36, %0, %cst_22 {dimension_numbers = #tpu.dot_dimension_numbers<[1], [0], [0], [1], [0, 0, 1, 1], [], []>} : vector<2x2xf32>, vector<2x256xf32>, vector<2x256xf32> -> vector<2x256xf32>
    %38 = vector.extract_strided_slice %37 {offsets = [0, 0], sizes = [1, 256], strides = [1, 1]} : vector<2x256xf32> to vector<1x256xf32>
    %39 = vector.broadcast %38 : vector<1x256xf32> to vector<16x256xf32>
    %40 = arith.subf %13, %39 : vector<16x256xf32>
    %41 = vector.extract_strided_slice %37 {offsets = [1, 0], sizes = [1, 256], strides = [1, 1]} : vector<2x256xf32> to vector<1x256xf32>
    %42 = vector.broadcast %41 : vector<1x256xf32> to vector<16x256xf32>
    %43 = arith.mulf %40, %42 : vector<16x256xf32>
    %44 = vector.broadcast %14 : vector<16x1xf32> to vector<16x256xf32>
    %45 = arith.mulf %44, %43 : vector<16x256xf32>
    %46 = vector.broadcast %15 : vector<16x1xf32> to vector<16x256xf32>
    %47 = arith.addf %45, %46 : vector<16x256xf32>
    %c0_23 = arith.constant 0 : index
    %c0_24 = arith.constant 0 : index
    %48 = vector.load %arg9[%c0_23, %c0_24] : memref<16x3xf32, #tpu.memory_space<vmem>>, vector<16x3xf32>
    %c2_i32 = arith.constant 2 : i32
    %49 = tpu.dynamic_rotate %47 by %c2_i32 dim 1 : vector<16x256xf32>, i32 -> vector<16x256xf32>
    %c2_i32_25 = arith.constant 2 : i32
    %50 = vector.broadcast %c2_i32_25 : i32 to vector<1x256xi32>
    %51 = arith.cmpi sge, %2, %50 : vector<1x256xi32>
    %c130_i32 = arith.constant 130 : i32
    %52 = vector.broadcast %c130_i32 : i32 to vector<1x256xi32>
    %53 = arith.cmpi slt, %2, %52 : vector<1x256xi32>
    %54 = arith.andi %51, %53 : vector<1x256xi1>
    %55 = vector.extract_strided_slice %48 {offsets = [0, 0], sizes = [16, 1], strides = [1, 1]} : vector<16x3xf32> to vector<16x1xf32>
    %56 = vector.broadcast %55 : vector<16x1xf32> to vector<16x256xf32>
    %57 = arith.mulf %56, %49 : vector<16x256xf32>
    %cst_26 = arith.constant 0.000000e+00 : f32
    %58 = vector.shape_cast %54 : vector<1x256xi1> to vector<1x256xi1>
    %59 = vector.broadcast %58 : vector<1x256xi1> to vector<16x256xi1>
    %60 = vector.broadcast %cst_26 : f32 to vector<16x256xf32>
    %61 = arith.select %59, %57, %60 : vector<16x256xi1>, vector<16x256xf32>
    %62 = vector.extract_strided_slice %48 {offsets = [0, 1], sizes = [16, 1], strides = [1, 1]} : vector<16x3xf32> to vector<16x1xf32>
    %63 = vector.broadcast %62 : vector<16x1xf32> to vector<16x256xf32>
    %64 = arith.mulf %63, %47 : vector<16x256xf32>
    %65 = arith.addf %61, %64 : vector<16x256xf32>
    %c254_i32 = arith.constant 254 : i32
    %66 = tpu.dynamic_rotate %47 by %c254_i32 dim 1 : vector<16x256xf32>, i32 -> vector<16x256xf32>
    %c-2_i32 = arith.constant -2 : i32
    %67 = vector.broadcast %c-2_i32 : i32 to vector<1x256xi32>
    %68 = arith.cmpi sge, %2, %67 : vector<1x256xi32>
    %c126_i32 = arith.constant 126 : i32
    %69 = vector.broadcast %c126_i32 : i32 to vector<1x256xi32>
    %70 = arith.cmpi slt, %2, %69 : vector<1x256xi32>
    %71 = arith.andi %68, %70 : vector<1x256xi1>
    %72 = vector.extract_strided_slice %48 {offsets = [0, 2], sizes = [16, 1], strides = [1, 1]} : vector<16x3xf32> to vector<16x1xf32>
    %73 = vector.broadcast %72 : vector<16x1xf32> to vector<16x256xf32>
    %74 = arith.mulf %73, %66 : vector<16x256xf32>
    %cst_27 = arith.constant 0.000000e+00 : f32
    %75 = vector.shape_cast %71 : vector<1x256xi1> to vector<1x256xi1>
    %76 = vector.broadcast %75 : vector<1x256xi1> to vector<16x256xi1>
    %77 = vector.broadcast %cst_27 : f32 to vector<16x256xf32>
    %78 = arith.select %76, %74, %77 : vector<16x256xi1>, vector<16x256xf32>
    %79 = arith.addf %65, %78 : vector<16x256xf32>
    %c0_28 = arith.constant 0 : index
    %80 = memref.load %arg10[%c0_28] : memref<1xf32, #tpu.memory_space<smem>>
    %cst_29 = arith.constant 0.000000e+00 : f32
    %81 = vector.broadcast %cst_29 : f32 to vector<16x256xf32>
    %82 = arith.cmpf oge, %79, %81 : vector<16x256xf32>
    %83 = vector.broadcast %80 : f32 to vector<16x256xf32>
    %84 = arith.mulf %83, %79 : vector<16x256xf32>
    %85 = arith.select %82, %79, %84 : vector<16x256xi1>, vector<16x256xf32>
    %c0_30 = arith.constant 0 : index
    %c0_31 = arith.constant 0 : index
    %86 = vector.load %arg11[%c0_30, %c0_31] : memref<16x1xf32, #tpu.memory_space<vmem>>, vector<16x1xf32>
    %c0_32 = arith.constant 0 : index
    %c0_33 = arith.constant 0 : index
    %87 = vector.load %arg12[%c0_32, %c0_33] : memref<16x1xf32, #tpu.memory_space<vmem>>, vector<16x1xf32>
    %cst_34 = arith.constant dense<0.000000e+00> : vector<256xf32>
    %88 = vector.multi_reduction <add>, %85, %cst_34 [0] : vector<16x256xf32> to vector<256xf32>
    %89 = vector.shape_cast %88 : vector<256xf32> to vector<1x256xf32>
    %90 = arith.mulf %85, %85 : vector<16x256xf32>
    %cst_35 = arith.constant dense<0.000000e+00> : vector<256xf32>
    %91 = vector.multi_reduction <add>, %90, %cst_35 [0] : vector<16x256xf32> to vector<256xf32>
    %92 = vector.shape_cast %91 : vector<256xf32> to vector<1x256xf32>
    %93 = tpu.concatenate %89, %92 in 0 : vector<1x256xf32>, vector<1x256xf32> -> vector<2x256xf32>
    %cst_36 = arith.constant dense<0.000000e+00> : vector<2x2xf32>
    %94 = tpu.matmul %93, %1, %cst_36 {dimension_numbers = #tpu.dot_dimension_numbers<[1], [0], [0], [1], [0, 0, 1, 1], [], []>} : vector<2x256xf32>, vector<256x2xf32>, vector<2x2xf32> -> vector<2x2xf32>
    %95 = vector.extract_strided_slice %94 {offsets = [0, 0], sizes = [1, 2], strides = [1, 1]} : vector<2x2xf32> to vector<1x2xf32>
    %cst_37 = arith.constant 4.8828125E-4 : f32
    %96 = vector.broadcast %cst_37 : f32 to vector<1x2xf32>
    %97 = arith.mulf %95, %96 : vector<1x2xf32>
    %98 = vector.extract_strided_slice %94 {offsets = [1, 0], sizes = [1, 2], strides = [1, 1]} : vector<2x2xf32> to vector<1x2xf32>
    %cst_38 = arith.constant 4.8828125E-4 : f32
    %99 = vector.broadcast %cst_38 : f32 to vector<1x2xf32>
    %100 = arith.mulf %98, %99 : vector<1x2xf32>
    %101 = arith.mulf %97, %97 : vector<1x2xf32>
    %102 = arith.subf %100, %101 : vector<1x2xf32>
    %cst_39 = arith.constant 0.000000e+00 : f32
    %103 = vector.broadcast %cst_39 : f32 to vector<1x2xf32>
    %104 = arith.maximumf %102, %103 : vector<1x2xf32>
    %cst_40 = arith.constant 9.99999993E-9 : f32
    %105 = vector.broadcast %cst_40 : f32 to vector<1x2xf32>
    %106 = arith.addf %104, %105 : vector<1x2xf32>
    %107 = math.rsqrt %106 : vector<1x2xf32>
    %108 = tpu.concatenate %97, %107 in 0 : vector<1x2xf32>, vector<1x2xf32> -> vector<2x2xf32>
    %cst_41 = arith.constant dense<0.000000e+00> : vector<2x256xf32>
    %109 = tpu.matmul %108, %0, %cst_41 {dimension_numbers = #tpu.dot_dimension_numbers<[1], [0], [0], [1], [0, 0, 1, 1], [], []>} : vector<2x2xf32>, vector<2x256xf32>, vector<2x256xf32> -> vector<2x256xf32>
    %110 = vector.extract_strided_slice %109 {offsets = [0, 0], sizes = [1, 256], strides = [1, 1]} : vector<2x256xf32> to vector<1x256xf32>
    %111 = vector.broadcast %110 : vector<1x256xf32> to vector<16x256xf32>
    %112 = arith.subf %85, %111 : vector<16x256xf32>
    %113 = vector.extract_strided_slice %109 {offsets = [1, 0], sizes = [1, 256], strides = [1, 1]} : vector<2x256xf32> to vector<1x256xf32>
    %114 = vector.broadcast %113 : vector<1x256xf32> to vector<16x256xf32>
    %115 = arith.mulf %112, %114 : vector<16x256xf32>
    %116 = vector.broadcast %86 : vector<16x1xf32> to vector<16x256xf32>
    %117 = arith.mulf %116, %115 : vector<16x256xf32>
    %118 = vector.broadcast %87 : vector<16x1xf32> to vector<16x256xf32>
    %119 = arith.addf %117, %118 : vector<16x256xf32>
    %c0_42 = arith.constant 0 : index
    %c0_43 = arith.constant 0 : index
    %120 = vector.load %arg13[%c0_42, %c0_43] : memref<8x16xf32, #tpu.memory_space<vmem>>, vector<8x16xf32>
    %121 = arith.truncf %120 : vector<8x16xf32> to vector<8x16xbf16>
    %122 = arith.truncf %119 : vector<16x256xf32> to vector<16x256xbf16>
    %cst_44 = arith.constant dense<0.000000e+00> : vector<8x256xf32>
    %123 = tpu.matmul %121, %122, %cst_44 {dimension_numbers = #tpu.dot_dimension_numbers<[1], [0], [0], [1], [0, 0, 1, 1], [], []>} : vector<8x16xbf16>, vector<16x256xbf16>, vector<8x256xf32> -> vector<8x256xf32>
    %c0_45 = arith.constant 0 : index
    %c0_46 = arith.constant 0 : index
    %124 = vector.load %arg4[%c0_45, %c0_46] : memref<8x256xf32, #tpu.memory_space<vmem>>, vector<8x256xf32>
    %125 = arith.addf %123, %124 : vector<8x256xf32>
    %c0_47 = arith.constant 0 : index
    %c0_48 = arith.constant 0 : index
    %126 = vector.load %arg14[%c0_47, %c0_48] : memref<8x256xf32, #tpu.memory_space<vmem>>, vector<8x256xf32>
    tpu.vector_store %arg14[%c0_47, %c0_48], %125 {strides = array<i32>} : memref<8x256xf32, #tpu.memory_space<vmem>>, vector<8x256xf32>,
    return
  }
  func.func @transform_0(%arg0: i32) -> (i32, i32) {
    %c0_i32 = arith.constant 0 : i32
    %c0_i32_0 = arith.constant 0 : i32
    %c0_i32_1 = arith.constant 0 : i32
    return %c0_i32, %c0_i32_0 : i32, i32
  }
  func.func @transform_1(%arg0: i32) -> (i32, i32) {
    %c0_i32 = arith.constant 0 : i32
    %c0_i32_0 = arith.constant 0 : i32
    %c0_i32_1 = arith.constant 0 : i32
    return %c0_i32, %c0_i32_0 : i32, i32
  }
  func.func @transform_2(%arg0: i32) -> (i32, i32) {
    %c0_i32 = arith.constant 0 : i32
    %c0_i32_0 = arith.constant 0 : i32
    %c0_i32_1 = arith.constant 0 : i32
    return %c0_i32, %c0_i32_0 : i32, i32
  }
  func.func @transform_3(%arg0: i32) -> (i32, i32) {
    %c0_i32 = arith.constant 0 : i32
    %c0_i32_0 = arith.constant 0 : i32
    return %c0_i32, %arg0 : i32, i32
  }
  func.func @transform_4(%arg0: i32) -> (i32, i32) {
    %c0_i32 = arith.constant 0 : i32
    %c0_i32_0 = arith.constant 0 : i32
    %c0_i32_1 = arith.constant 0 : i32
    return %c0_i32, %c0_i32_0 : i32, i32
  }
  func.func @transform_5(%arg0: i32) -> i32 {
    %c0_i32 = arith.constant 0 : i32
    %c0_i32_0 = arith.constant 0 : i32
    return %c0_i32 : i32
  }
  func.func @transform_6(%arg0: i32) -> (i32, i32) {
    %c0_i32 = arith.constant 0 : i32
    %c0_i32_0 = arith.constant 0 : i32
    %c0_i32_1 = arith.constant 0 : i32
    return %c0_i32, %c0_i32_0 : i32, i32
  }
  func.func @transform_7(%arg0: i32) -> (i32, i32) {
    %c0_i32 = arith.constant 0 : i32
    %c0_i32_0 = arith.constant 0 : i32
    %c0_i32_1 = arith.constant 0 : i32
    return %c0_i32, %c0_i32_0 : i32, i32
  }
  func.func @transform_8(%arg0: i32) -> (i32, i32) {
    %c0_i32 = arith.constant 0 : i32
    %c0_i32_0 = arith.constant 0 : i32
    %c0_i32_1 = arith.constant 0 : i32
    return %c0_i32, %c0_i32_0 : i32, i32
  }
  func.func @transform_9(%arg0: i32) -> i32 {
    %c0_i32 = arith.constant 0 : i32
    %c0_i32_0 = arith.constant 0 : i32
    return %c0_i32 : i32
  }
  func.func @transform_10(%arg0: i32) -> (i32, i32) {
    %c0_i32 = arith.constant 0 : i32
    %c0_i32_0 = arith.constant 0 : i32
    %c0_i32_1 = arith.constant 0 : i32
    return %c0_i32, %c0_i32_0 : i32, i32
  }
  func.func @transform_11(%arg0: i32) -> (i32, i32) {
    %c0_i32 = arith.constant 0 : i32
    %c0_i32_0 = arith.constant 0 : i32
    %c0_i32_1 = arith.constant 0 : i32
    return %c0_i32, %c0_i32_0 : i32, i32
  }
  func.func @transform_12(%arg0: i32) -> (i32, i32) {
    %c0_i32 = arith.constant 0 : i32
    %c0_i32_0 = arith.constant 0 : i32
    %c0_i32_1 = arith.constant 0 : i32
    return %c0_i32, %c0_i32_0 : i32, i32
  }
  func.func @transform_13(%arg0: i32) -> (i32, i32) {
    %c0_i32 = arith.constant 0 : i32
    %c0_i32_0 = arith.constant 0 : i32
    return %c0_i32, %arg0 : i32, i32
  }
}

</mosaic_0001>

<bundles_post_ra>
// kernel: tpu_custom_call.1
= control target key start
LH: loop header
LB: loop body
LE: loop exit
PB: predicated region body
PF: predicated region fallthrough
CT: control target
= control target key end

     0   :  { %s1863_s0 = inlined_call_operand.vmem [shape: f32[2,256], index: 0, kind: input, shape index: {}]   ;;  %s1864_s1 = inlined_call_operand.vmem [shape: f32[256,2], index: 1, kind: input, shape index: {}]   ;;  %s1865_s2 = inlined_call_operand.vmem [shape: s32[1,256], index: 2, kind: input, shape index: {}]   ;;  %s1866_s3 = inlined_call_operand.vmem [shape: f32[8,512], index: 3, kind: input, shape index: {}]   ;;  %s1867_s4 = inlined_call_operand.vmem [shape: f32[16,8], index: 4, kind: input, shape index: {}]   ;;  %s1868_s5 = inlined_call_operand.<no memory space> [shape: f32[1], index: 5, kind: input, shape index: {}]   ;;  %s1869_s6 = inlined_call_operand.vmem [shape: f32[16,1], index: 6, kind: input, shape index: {}]   ;;  %s1870_s7 = inlined_call_operand.vmem [shape: f32[16,1], index: 7, kind: input, shape index: {}]   ;;  %s1871_s8 = inlined_call_operand.vmem [shape: f32[16,3], index: 8, kind: input, shape index: {}]   ;;  %s1872_s9 = inlined_call_operand.<no memory space> [shape: f32[1], index: 9, kind: input, shape index: {}]   ;;  %s1873_s10 = inlined_call_operand.vmem [shape: f32[16,1], index: 10, kind: input, shape index: {}]   ;;  %s1874_s11 = inlined_call_operand.vmem [shape: f32[16,1], index: 11, kind: input, shape index: {}]   ;;  %s1875_s12 = inlined_call_operand.vmem [shape: f32[8,16], index: 12, kind: input, shape index: {}]   ;;  %s1876_s13 = inlined_call_operand.hbm [shape: f32[8,512], index: 13, kind: output, shape index: {}]  }
   0x1   :  { %1878 = sst [smem:[#allocation8_spill]] %s1863_s0 }
   0x2   :  { %18 = sst [smem:[#allocation2]] %s1868_s5 }
   0x3   :  { %19 = sst [smem:[#allocation3]] %s1872_s9 }
   0x4   :  { %20 = vsyncpa [#allocation5], 0 }
   0x5   :  { %22 = vsyncpa [#allocation5 + $0x1], 0  ;;  %s1370_s29 = smov 0   ;;  %s1372_s30 = smov 0  }
   0x6   :  { %s1374_s14 = smov 0   ;;  %s1376_s15 = smov 0  }
   0x7 LB: > { %s1391_s5 = sadd.s32 4294967295, %s1287_s15   ;;  %s1143_s9 = sadd.s32 4294967294, %s1287_s15   ;;  %s1287_s15 = sphi %s1376_s15, %s1895_s15   ;;  %s1283_s14 = sphi %s1374_s14, %s1894_s14   ;;  %s1279_s30 = sphi %s1372_s30, %s1893_s30   ;;  %s1275_s29 = sphi %s1370_s29, %s1892_s29  }
   0x8   : > { %s1395_s16 = sadd.s32 1, %s1287_s15   ;;  %s313_s17 = sadd.s32 1, %s1283_s14 }
   0x9   : > { %s310_s18 = ssub.s32 %s1287_s15, %s1395_s16  ;;  %p323_p0 = scmp.ne.s32.totalorder %s1283_s14, %s1279_s30 }
   0xa   : > { %p311_p1 = scmp.eq.s32.totalorder %s310_s18, 0  ;;  %p324_p2 = scmp.eq.s32.totalorder %s1391_s5, 1 }
   0xb   : > { %p329_p3 = scmp.ne.s32.totalorder %s1279_s30, %s1275_s29  ;;  %p330_p4 = scmp.eq.s32.totalorder %s1143_s9, 1 }
   0xc   : > { %s1406_s19 = scalar_select %p311_p1, %s1283_s14, %s313_s17  }
   0xd   : > { %p1408_p5 = por %p324_p2, %p323_p0  ;;  %p1412_p6 = por %p330_p4, %p329_p3 }
   0xe   : > { %p1146_p7 = scmp.ge.s32.totalorder %s1287_s15, 1  ;;  %p393_p8 = scmp.lt.s32.totalorder %s1287_s15, 3 }
  0x10   : > { %p394_p9 = pnand %p1146_p7, %p393_p8 }
  0x12   : > { %397 = sbr.rel (%p394_p9) target bundleno = 1094 (0x446), region = 72 }
  0x17   : > { %s1148_s22 = sshll.u32 %s1391_s5, 1  ;;  %v1422_v0 = vld [vmem:[%s1864_s1 + $0x78] sm:$0xff]  ;;  %v479_v2 = vld [vmem:[%s1867_s4] sm:$0xff]  ;;  %vm490_vm0 = vcmask 1043456   ;;  %v480_v5 = vld [vmem:[%s1867_s4 + $0x8] sm:$0xff]  ;;  %vm486_vm1 = vcmask 64512  }
  0x18   : > { %p438_p10 = scmp.lt.s32.totalorder %s1148_s22, 3  ;;  %578 = vmatpush.msra.mxu2 %v1422_v0  ;;  %v1428_v1 = vld [vmem:[%s1864_s1 + $0xf8] sm:$0xff]  ;;  %v483_v10 = vpack.c.bf16 %v480_v5, %v479_v2  ;;  %v1451_v11 = vld [vmem:[%s1864_s1 + $0x70] sm:$0xff]  ;;  %v1463_v13 = vld [vmem:[%s1864_s1 + $0x68] sm:$0xff]  ;;  %s525_s18 = sld [smem:[#allocation2]]  ;;  %vm575_vm6 = vcmask 1040384  }
  0x19   : > { %598 = vmatpush.msra.mxu3 %v1428_v1  ;;  %v1456_v12 = vld [vmem:[%s1864_s1 + $0xf0] sm:$0xff]  ;;  %v1468_v14 = vld [vmem:[%s1864_s1 + $0xe8] sm:$0xff]  ;;  %v1475_v15 = vld [vmem:[%s1864_s1 + $0x60] sm:$0xff]  ;;  %s1882_s0 = sld [smem:[#allocation8_spill]]  ;;  %vm645_vm7 = vcmask 1041408   ;;  %vm641_vm11 = vcmask 15360  }
  0x1a   : > { %s1897_s22 = smov (!%p438_p10, %s1148_s22), 3  ;;  %579 = vmatpush.msra.mxu2 %v1451_v11  ;;  %v1480_v16 = vld [vmem:[%s1864_s1 + $0xe0] sm:$0xff]  ;;  %v1487_v17 = vld [vmem:[%s1864_s1 + $0x58] sm:$0xff]  ;;  %v1499_v19 = vld [vmem:[%s1864_s1 + $0x50] sm:$0xff]  ;;  %s830_s28 = sld [smem:[#allocation3]] }
  0x1b   : > { %s1149_s27 = sshll.u32 %s1897_s22, 3  ;;  %599 = vmatpush.msra.mxu3 %v1456_v12  ;;  %v1492_v18 = vld [vmem:[%s1864_s1 + $0xd8] sm:$0xff]  ;;  %v1504_v20 = vld [vmem:[%s1864_s1 + $0xd0] sm:$0xff]  ;;  %v1511_v21 = vld [vmem:[%s1864_s1 + $0x48] sm:$0xff]  ;;  %s434_s22 = sand.u32 1, %s1279_s30  }
  0x1c   : > { %s441_s17 = scalar_lea.vmem %s1866_s3, %s1149_s27  ;;  %580 = vmatpush.msra.mxu2 %v1463_v13  ;;  %v1516_v22 = vld [vmem:[%s1864_s1 + $0xc8] sm:$0xff]  ;;  %v1523_v23 = vld [vmem:[%s1864_s1 + $0x40] sm:$0xff]  ;;  %v1535_v25 = vld [vmem:[%s1864_s1 + $0x38] sm:$0xff]  ;;  %s1167_s26 = sshll.u32 %s1391_s5, 4 }
  0x1d   : > { %v1437_v3 = vld [vmem:[%s441_s17] sm:$0xff]  ;;  %v1439_v4 = vld [vmem:[%s441_s17 + $0x8] sm:$0xff]  ;;  %600 = vmatpush.msra.mxu3 %v1468_v14  ;;  %v1540_v26 = vld [vmem:[%s1864_s1 + $0xb8] sm:$0xff]  ;;  %s1292_s17 = smov 2   ;;  %s1147_s27 = sshll.u32 %s434_s22, 4 }
  0x1e   : > { %1881 = vst [vmem:[#allocation7_spill] sm:$0xff] %v1439_v4  ;;  %v484_v6 = vpack.c.bf16 %v1437_v3, %v1437_v3  ;;  %v485_v7 = vpack.c.bf16 %v1439_v4, %v1439_v4  ;;  %581 = vmatpush.msra.mxu2 %v1475_v15  ;;  %v1528_v24 = vld [vmem:[%s1864_s1 + $0xc0] sm:$0xff]  ;;  %v1547_v27 = vld [vmem:[%s1864_s1 + $0x30] sm:$0xff]  ;;  %v1559_v29 = vld [vmem:[%s1864_s1 + $0x28] sm:$0xff]  ;;  %v530_v43 = vstv %s525_s18  ;;  %s1293_s18 = smov 126   ;;  %s1068_s5 = scalar_lea.sflag [#allocation5], %s434_s22 }
  0x1f   : > { %601 = vmatpush.msra.mxu3 %v1480_v16  ;;  %v1552_v28 = vld [vmem:[%s1864_s1 + $0xb0] sm:$0xff]  ;;  %v1564_v30 = vld [vmem:[%s1864_s1 + $0xa8] sm:$0xff]  ;;  %v1569_v31 = vld [vmem:[%s1864_s1 + $0x20] sm:$0xff] }
  0x20   : > { %v492_v8 = vsel %vm490_vm0, %v484_v6, 0  ;;  %v495_v9 = vsel %vm490_vm0, %v485_v7, 0  ;;  %582 = vmatpush.msra.mxu2 %v1487_v17  ;;  %v1574_v32 = vld [vmem:[%s1864_s1 + $0xa0] sm:$0xff]  ;;  %v1581_v33 = vld [vmem:[%s1864_s1 + $0x18] sm:$0xff]  ;;  %v1593_v35 = vld [vmem:[%s1864_s1 + $0x10] sm:$0xff] }
  0x21   : > { %504 = vmatpush.bf16.msra.mxu0 %v492_v8  ;;  %518 = vmatpush.bf16.msra.mxu1 %v495_v9  ;;  %v1586_v34 = vld [vmem:[%s1864_s1 + $0x98] sm:$0xff]  ;;  %v1598_v36 = vld [vmem:[%s1864_s1 + $0x90] sm:$0xff]  ;;  %v1605_v37 = vld [vmem:[%s1864_s1 + $0x8] sm:$0xff] }
  0x22   : > { %602 = vmatpush.msra.mxu3 %v1492_v18  ;;  %583 = vmatpush.msra.mxu2 %v1499_v19  ;;  %v1610_v38 = vld [vmem:[%s1864_s1 + $0x88] sm:$0xff]  ;;  %v1617_v39 = vld [vmem:[%s1864_s1] sm:$0xff] }
  0x23   : > { %v1622_v40 = vld [vmem:[%s1864_s1 + $0x80] sm:$0xff] }
  0x24   : > { %1150 = vmatmul.msk.bf16.vlgmr.msra.gmra.mxu0 %vm486_vm1, %v483_v10  ;;  %1151 = vmatmul.msk.bf16.vlgmr.msra.gmra.mxu1 %vm486_vm1, %v483_v10 }
  0x25   : > { %603 = vmatpush.msra.mxu3 %v1504_v20  ;;  %584 = vmatpush.msra.mxu2 %v1511_v21 }
  0x27   : > { %604 = vmatpush.msra.mxu3 %v1516_v22  ;;  %585 = vmatpush.msra.mxu2 %v1523_v23 }
  0x29   : > { %605 = vmatpush.msra.mxu3 %v1528_v24  ;;  %586 = vmatpush.msra.mxu2 %v1535_v25 }
  0x2b   : > { %606 = vmatpush.msra.mxu3 %v1540_v26  ;;  %587 = vmatpush.msra.mxu2 %v1547_v27 }
  0x2d   : > { %607 = vmatpush.msra.mxu3 %v1552_v28  ;;  %588 = vmatpush.msra.mxu2 %v1559_v29 }
  0x2f   : > { %608 = vmatpush.msra.mxu3 %v1564_v30  ;;  %589 = vmatpush.msra.mxu2 %v1569_v31 }
  0x31   : > { %609 = vmatpush.msra.mxu3 %v1574_v32  ;;  %590 = vmatpush.msra.mxu2 %v1581_v33 }
  0x33   : > { %610 = vmatpush.msra.mxu3 %v1586_v34  ;;  %591 = vmatpush.msra.mxu2 %v1593_v35 }
  0x35   : > { %611 = vmatpush.msra.mxu3 %v1598_v36  ;;  %592 = vmatpush.msra.mxu2 %v1605_v37 }
  0x37   : > { %612 = vmatpush.msra.mxu3 %v1610_v38  ;;  %593 = vmatpush.msra.mxu2 %v1617_v39 }
  0x39   : > { %613 = vmatpush.msra.mxu3 %v1622_v40 }
  0xa1   : > { %v506_v41 = vpop.f32.mrf.mxu0  ;;  %v520_v42 = vpop.f32.mrf.mxu1 }
  0xa2   : > { %v531_v44 = vmul.f32 %v530_v43, %v506_v41  ;;  %v532_v45 = vmul.f32 %v530_v43, %v520_v42  ;;  %vm526_vm2 = vcmp.ge.f32.partialorder %v506_v41, 0.0  ;;  %vm527_vm3 = vcmp.ge.f32.partialorder %v520_v42, 0.0 }
  0xa4   : > { %v1628_v46 = vsel %vm526_vm2, %v506_v41, %v531_v44  ;;  %v1630_v47 = vsel %vm527_vm3, %v520_v42, %v532_v45 }
  0xa5   : > { %v557_v52 = vmul.f32 %v1628_v46, %v1628_v46  ;;  %v558_v53 = vmul.f32 %v1630_v47, %v1630_v47 }
  0xa9   : > { %v508_v48 = vpop.f32.mrf.mxu0  ;;  %v522_v49 = vpop.f32.mrf.mxu1 }
  0xaa   : > { %vm528_vm4 = vcmp.ge.f32.partialorder %v508_v48, 0.0  ;;  %v533_v50 = vmul.f32 %v530_v43, %v508_v48  ;;  %vm529_vm5 = vcmp.ge.f32.partialorder %v522_v49, 0.0  ;;  %v534_v51 = vmul.f32 %v530_v43, %v522_v49 }
  0xac   : > { %v1636_v54 = vsel %vm528_vm4, %v508_v48, %v533_v50  ;;  %v1638_v55 = vsel %vm529_vm5, %v522_v49, %v534_v51 }
  0xad   : > { %v543_v56 = vadd.f32 %v1636_v54, %v1628_v46  ;;  %v559_v57 = vmul.f32 %v1636_v54, %v1636_v54  ;;  %v550_v58 = vadd.f32 %v1638_v55, %v1630_v47  ;;  %v560_v59 = vmul.f32 %v1638_v55, %v1638_v55 }
  0xaf   : > { %v544_v60 = vrot.slane %v543_v56, 4  ;;  %v561_v61 = vadd.f32 %v559_v57, %v557_v52  ;;  %v551_v62 = vrot.slane %v550_v58, 4  ;;  %v568_v63 = vadd.f32 %v560_v59, %v558_v53 }
  0xb1   : > { %v545_v2 = vadd.f32 %v544_v60, %v543_v56  ;;  %v562_v5 = vrot.slane %v561_v61, 4  ;;  %v552_v6 = vadd.f32 %v551_v62, %v550_v58  ;;  %v569_v7 = vrot.slane %v568_v63, 4  ;;  %v539_v62 = vld [vmem:[%s1869_s6] sm:$0xff] }
  0xb3   : > { %v546_v8 = vrot.slane %v545_v2, 2  ;;  %v563_v9 = vadd.f32 %v562_v5, %v561_v61  ;;  %v553_v10 = vrot.slane %v552_v6, 2  ;;  %v570_v41 = vadd.f32 %v569_v7, %v568_v63  ;;  %v445_v61 = vld [vmem:[%s1882_s0] sm:$0xf] }
  0xb4   : > { %638 = vst [vmem:[#allocation1] ss:$4 sm:$0xff] %v445_v61  ;;  %v1289_v63 = vmov 0  }
  0xb5   : > { %v547_v42 = vadd.f32 %v546_v8, %v545_v2  ;;  %v564_v43 = vrot.slane %v563_v9, 2  ;;  %v554_v44 = vadd.f32 %v553_v10, %v552_v6  ;;  %v571_v45 = vrot.slane %v570_v41, 2  ;;  %1212 = vset.pattern.permute.xlu0 %v1289_v63  ;;  %1213 = vset.pattern.permute.xlu1 %v1289_v63  ;;  %v540_v8 = vld [vmem:[%s1869_s6 + $0x8] sm:$0xff] }
  0xb6   : > { %704 = vperm.xlu0 %1212, %v539_v62   ;;  %1214 = vset.pattern.permute.xlu2 %v1289_v63 }
  0xb7   : > { %v548_v48 = vrot.slane %v547_v42, 1  ;;  %v565_v49 = vadd.f32 %v564_v43, %v563_v9  ;;  %v555_v50 = vrot.slane %v554_v44, 1  ;;  %v572_v51 = vadd.f32 %v571_v45, %v570_v41  ;;  %v541_v9 = vld [vmem:[%s1870_s7] sm:$0xff]  ;;  %v542_v43 = vld [vmem:[%s1870_s7 + $0x8] sm:$0xff] }
  0xb8   : > { %718 = vperm.xlu1 %1213, %v541_v9   ;;  %v1672_v41 = vld [vmem:[%s1871_s8] sm:$0xff] }
  0xb9   : > { %v566_v4 = vrot.slane %v565_v49, 1  ;;  %v573_v52 = vrot.slane %v572_v51, 1  ;;  %v549_v53 = vadd.f32 %v548_v48, %v547_v42  ;;  %v556_v57 = vadd.f32 %v555_v50, %v554_v44  ;;  %752 = vperm.xlu2 %1214, %v1672_v41  }
  0xbb   : > { %v567_v56 = vadd.f32 %v566_v4, %v565_v49  ;;  %v574_v58 = vadd.f32 %v573_v52, %v572_v51  ;;  %v640_v5 = vld.sshfl [vmem:[#allocation1 + $0x8] sm:$0xff pattern:$0x73625140]  ;;  %v639_v6 = vld.sshfl [vmem:[#allocation1] sm:$0xff pattern:$0x73625140] }
  0xbc   : > { %1154 = vmatpush.msk.msrb.mxu1 %vm645_vm7, %v640_v5  ;;  %1152 = vmatpush.msk.msrb.mxu0 %vm645_vm7, %v639_v6  ;;  %941 = vst [vmem:[#allocation1] ss:$4 sm:$0xff] %v445_v61  ;;  %v847_v52 = vld [vmem:[%s1874_s11 + $0x8] sm:$0xff]  ;;  %v740_v61 = vlaneseq }
  0xbd   : > { %v576_v59 = vsel %vm575_vm6, %v549_v53, %v567_v56  ;;  %v577_v60 = vsel %vm575_vm6, %v556_v57, %v574_v58 }
  0xbe   : > { %594 = vmatmul.f32.vlgmr.msra.gmra.mxu2 %v576_v59  ;;  %614 = vmatmul.f32.vlgmr.msra.gmra.mxu3 %v577_v60  ;;  %v478_v60 = vld [vmem:[%s1865_s2] sm:$0x3] }
  0xbf   : > { %882 = vmatpush.msra.mxu0 %v1422_v0  ;;  %902 = vmatpush.msra.mxu1 %v1428_v1  ;;  %v1682_v1 = vld [vmem:[%s1871_s8 + $0x8] sm:$0xff]  ;;  %vm747_vm12 = vcmp.ge.s32.totalorder %v478_v60, 2  ;;  %vm748_vm13 = vcmp.lt.s32.totalorder %v478_v60, 130  ;;  %vm802_vm15 = vcmp.ge.s32.totalorder %v478_v60, 4294967294  ;;  %vm803_vm0 = vcmp.lt.s32.totalorder %v478_v60, 126 }
  0xc0   : > { %709 = vperm.xlu0 %1212, %v540_v8   ;;  %723 = vperm.xlu1 %1213, %v542_v43   ;;  %vm749_vm14 = vmand %vm747_vm12, %vm748_vm13 }
  0xc1   : > { %883 = vmatpush.msra.mxu0 %v1451_v11  ;;  %903 = vmatpush.msra.mxu1 %v1456_v12  ;;  %v764_v6 = vsel %vm749_vm14, 1, %v1289_v63  ;;  %vm804_vm2 = vmand %vm802_vm15, %vm803_vm0 }
  0xc2   : > { %v765_v8 = vperm.slane %v764_v6, 0  ;;  %v766_v9 = vperm.slane %v764_v6, 1 }
  0xc3   : > { %884 = vmatpush.msra.mxu0 %v1463_v13  ;;  %904 = vmatpush.msra.mxu1 %v1468_v14  ;;  %v1290_v13 = vmov 1  }
  0xc4   : > { %1216 = vset.pattern.permute.xlu2 %v1290_v13  ;;  %vm1750_vm3 = vcmp.eq.s32.totalorder %v765_v8, 1  ;;  %vm1754_vm4 = vcmp.eq.s32.totalorder %v766_v9, 1 }
  0xc5   : > { %885 = vmatpush.msra.mxu0 %v1475_v15  ;;  %905 = vmatpush.msra.mxu1 %v1480_v16 }
  0xc6   : > { %778 = vperm.xlu2 %1216, %v1682_v1  }
  0xc7   : > { %886 = vmatpush.msra.mxu0 %v1487_v17  ;;  %906 = vmatpush.msra.mxu1 %v1492_v18 }
  0xc8   : > { %757 = vperm.xlu0 %1212, %v1682_v1   ;;  %1215 = vset.pattern.permute.xlu1 %v1290_v13 }
  0xc9   : > { %887 = vmatpush.msra.mxu0 %v1499_v19  ;;  %907 = vmatpush.msra.mxu1 %v1504_v20 }
  0xca   : > { %774 = vperm.xlu1 %1215, %v1672_v41  }
  0xcb   : > { %888 = vmatpush.msra.mxu0 %v1511_v21  ;;  %908 = vmatpush.msra.mxu1 %v1516_v22 }
  0xcd   : > { %889 = vmatpush.msra.mxu0 %v1523_v23  ;;  %909 = vmatpush.msra.mxu1 %v1528_v24  ;;  %v1291_v23 = vmov 2  }
  0xce   : > { %1218 = vset.pattern.permute.xlu2 %v1291_v23 }
  0xcf   : > { %890 = vmatpush.msra.mxu0 %v1535_v25  ;;  %910 = vmatpush.msra.mxu1 %v1540_v26 }
  0xd1   : > { %891 = vmatpush.msra.mxu0 %v1547_v27  ;;  %911 = vmatpush.msra.mxu1 %v1552_v28 }
  0xd2   : > { %1217 = vset.pattern.permute.xlu1 %v1291_v23 }
  0xd3   : > { %892 = vmatpush.msra.mxu0 %v1559_v29  ;;  %912 = vmatpush.msra.mxu1 %v1564_v30 }
  0xd5   : > { %893 = vmatpush.msra.mxu0 %v1569_v31  ;;  %913 = vmatpush.msra.mxu1 %v1574_v32 }
  0xd7   : > { %894 = vmatpush.msra.mxu0 %v1581_v33  ;;  %914 = vmatpush.msra.mxu1 %v1586_v34 }
  0xd9   : > { %895 = vmatpush.msra.mxu0 %v1593_v35  ;;  %915 = vmatpush.msra.mxu1 %v1598_v36 }
  0xdb   : > { %896 = vmatpush.msra.mxu0 %v1605_v37  ;;  %916 = vmatpush.msra.mxu1 %v1610_v38 }
  0xdd   : > { %897 = vmatpush.msra.mxu0 %v1617_v39  ;;  %917 = vmatpush.msra.mxu1 %v1622_v40 }
 0x113   : > { %v753_v53 = vpop.permute.xlu2 %752 }
 0x120   : > { %v779_v56 = vpop.permute.xlu2 %778 }
 0x128   : > { %v705_v24 = vpop.permute.xlu0 %704 }
 0x12a   : > { %v719_v25 = vpop.permute.xlu1 %718 }
 0x132   : > { %v710_v39 = vpop.permute.xlu0 %709  ;;  %v724_v48 = vpop.permute.xlu1 %723 }
 0x13a   : > { %v758_v59 = vpop.permute.xlu0 %757 }
 0x13c   : > { %v775_v58 = vpop.permute.xlu1 %774 }
 0x141   : > { %v595_v4 = vpop.f32.mrf.mxu2  ;;  %v615_v2 = vpop.f32.mrf.mxu3 }
 0x142   : > { %v616_v7 = vadd.f32 %v615_v2, %v595_v4  ;;  %v741_v2 = vand.u32 127, %v740_v61 }
 0x144   : > { %v618_v10 = vmul.f32 0.00048828125, %v616_v7  ;;  %vm742_vm1 = vcmp.lt.s32.totalorder %v741_v2, 2  ;;  %vm797_vm5 = vcmp.lt.s32.totalorder %v741_v2, 126 }
 0x146   : > { %v619_v42 = vmul.f32 %v618_v10, %v618_v10 }
 0x148   : > { %v621_v0 = vrot.slane %v619_v42, 7 }
 0x14a   : > { %v623_v11 = vsub.f32 %v618_v10, %v621_v0 }
 0x14c   : > { %v624_v12 = vmax.f32 %v623_v11, 0.0 }
 0x14e   : > { %v625_v14 = vadd.f32 1e-08, %v624_v12 }
 0x150   : > { %1221 = vrsqrt.f32 %v625_v14  ;;  %vm632_vm9 = vweird.f32 %v625_v14 }
 0x156   : > { %v1222_v15 = vpop.eup %1221 }
 0x157   : > { %v627_v16 = vmul.f32 %v1222_v15, %v625_v14  ;;  %vm633_vm8 = vweird.f32 %v1222_v15 }
 0x158   : > { %vm634_vm10 = vmor %vm632_vm9, %vm633_vm8 }
 0x159   : > { %v628_v17 = vmul.f32 %v1222_v15, %v627_v16 }
 0x15b   : > { %v629_v18 = vmul.f32 0.5, %v628_v17 }
 0x15d   : > { %v630_v19 = vsub.f32 1.5, %v629_v18 }
 0x15f   : > { %v631_v20 = vmul.f32 %v1222_v15, %v630_v19 }
 0x161   : > { %v635_v21 = vsel %vm634_vm10, %v1222_v15, %v631_v20 }
 0x162   : > { %v636_v22 = vsel %vm575_vm6, %v618_v10, %v635_v21 }
 0x163   : > { %1153 = vmatmul.msk.f32.vlgmr.msrb.gmra.mxu0 %vm641_vm11, %v636_v22  ;;  %1155 = vmatmul.msk.f32.vlgmr.msrb.gmra.mxu1 %vm641_vm11, %v636_v22 }
 0x1e0   : > { %v667_v26 = vpop.f32.mrf.mxu0  ;;  %v687_v27 = vpop.f32.mrf.mxu1 }
 0x1e1   : > { %v690_v28 = vperm.slane %v667_v26, 0  ;;  %v691_v29 = vperm.slane %v687_v27, 0  ;;  %v696_v30 = vperm.slane %v667_v26, 1  ;;  %v697_v34 = vperm.slane %v687_v27, 1 }
 0x1e3   : > { %v692_v31 = vsub.f32 %v1628_v46, %v690_v28  ;;  %v693_v32 = vsub.f32 %v1630_v47, %v691_v29  ;;  %v695_v33 = vsub.f32 %v1638_v55, %v691_v29  ;;  %v694_v35 = vsub.f32 %v1636_v54, %v690_v28  ;;  %v844_v55 = vld [vmem:[%s1873_s10] sm:$0xff] }
 0x1e5   : > { %v698_v36 = vmul.f32 %v696_v30, %v692_v31  ;;  %v699_v37 = vmul.f32 %v697_v34, %v693_v32  ;;  %v701_v38 = vmul.f32 %v697_v34, %v695_v33  ;;  %v700_v49 = vmul.f32 %v696_v30, %v694_v35 }
 0x1e7   : > { %v712_v40 = vmul.f32 %v705_v24, %v698_v36  ;;  %v713_v44 = vmul.f32 %v705_v24, %v699_v37  ;;  %v715_v45 = vmul.f32 %v710_v39, %v701_v38  ;;  %v714_v47 = vmul.f32 %v710_v39, %v700_v49 }
 0x1e9   : > { %v1723_v50 = vadd.f32 %v724_v48, %v715_v45  ;;  %v1725_v51 = vadd.f32 %v719_v25, %v712_v40  ;;  %v1727_v46 = vadd.f32 %v719_v25, %v713_v44  ;;  %v728_v54 = vadd.f32 %v724_v48, %v714_v47 }
 0x1ea   : > { %v835_v25 = vstv %s830_s28  ;;  %s1245_s28 = scalar_lea.hbm %s1876_s13, 32 }
 0x1eb   : > { %738 = vrot.lane.b32.xlu1 %v1723_v50, %s1292_s17  ;;  %736 = vrot.lane.b32.xlu0 %v1727_v46, %s1292_s17  ;;  %v783_v20 = vmul.f32 %v779_v56, %v728_v54  ;;  %v781_v21 = vmul.f32 %v775_v58, %v1725_v51  ;;  %v782_v22 = vmul.f32 %v775_v58, %v1727_v46 }
 0x1ec   : > { %732 = vrot.lane.b32.xlu2 %v1725_v51, %s1292_s17 }
 0x1f3   : > { %791 = vrot.lane.b32.xlu1 %v728_v54, %s1293_s18  ;;  %789 = vrot.lane.b32.xlu0 %v1725_v51, %s1293_s18 }
 0x1f4   : > { %734 = vrot.lane.b32.xlu2 %v728_v54, %s1292_s17  ;;  %s1079_s17 = scalar_lea.hbm %s1876_s13, %s1167_s26 }
 0x1f5   : > { %s1083_s24 = sshll.u32 %s1079_s17, 4  ;;  %s1084_s24 = int_to_ptr.hbm [resolvable:$true] %s1083_s24 }
 0x1f6   : > { %s1239_s25 = sshra.s32 %s1084_s24, 4  ;;  %s1240_s25 = int_to_ptr.hbm [resolvable:$true] %s1239_s25 }
 0x1f7   : > { %s1241_s0 = scalar_lea.hbm %s1240_s25, 16  ;;  %p1246_p0 = scmp.lt.s32.totalorder %s1240_s25, %s1876_s13 }
 0x1f8   : > { %p1242_p11 = scmp.ne.s32.totalorder %s1240_s25, %s1241_s0  ;;  %p1247_p1 = scmp.lt.s32.totalorder %s1245_s28, %s1241_s0 }
 0x1fa   : > { %p1243_p12 = pnand %p1242_p11, %p1408_p5  ;;  %p1248_p2 = por %p1247_p1, %p1246_p0 }
 0x1fb   : > { %806 = vperm.xlu1 %1217, %v1672_v41   ;;  %795 = vrot.lane.b32.xlu0 %v1723_v50, %s1293_s18 }
 0x1fc   : > { %793 = vrot.lane.b32.xlu2 %v1727_v46, %s1293_s18  ;;  %s436_s18 = scalar_lea.vmem [#allocation4], %s1147_s27  ;;  %p1244_p13 = pneg %p1243_p12 }
 0x1fd   : > { %s1081_s23 = sshll.u32 %s436_s18, 4  ;;  %s1082_s23 = int_to_ptr.vmem [resolvable:$true] %s1081_s23 }
 0x1fe   : > { %p1249_p3 = pnand %p1248_p2, %p1244_p13 }
 0x203   : > { %1219 = vset.pattern.permute.xlu1 %v1289_v63  ;;  %1005 = vperm.xlu0 %1212, %v844_v55  }
 0x204   : > { %810 = vperm.xlu2 %1218, %v1682_v1   ;;  %v817_v1 = vsel %vm804_vm2, 1, %v1289_v63 }
 0x205   : > { %v818_v16 = vperm.slane %v817_v1, 0  ;;  %v819_v17 = vperm.slane %v817_v1, 1 }
 0x207   : > { %vm1767_vm8 = vcmp.eq.s32.totalorder %v818_v16, 1  ;;  %vm1771_vm9 = vcmp.eq.s32.totalorder %v819_v17, 1 }
 0x20b   : > { %1024 = vperm.xlu0 %1212, %v847_v52  }
 0x20c   : > { %1220 = vset.pattern.permute.xlu2 %v1289_v63  ;;  %v784_v63 = vmul.f32 %v779_v56, %v1723_v50 }
 0x246   : > { %v733_v57 = vpop.permute.xlu2 %732 }
 0x24e   : > { %v735_v62 = vpop.permute.xlu2 %734 }
 0x256   : > { %v794_v7 = vpop.permute.xlu2 %793 }
 0x25d   : > { %v739_v4 = vpop.permute.xlu1 %738  ;;  %v737_v5 = vpop.permute.xlu0 %736 }
 0x25e   : > { %v743_v10 = vsel %vm742_vm1, %v733_v57, %v737_v5  ;;  %v745_v41 = vsel %vm742_vm1, %v737_v5, %v733_v57  ;;  %v744_v43 = vsel %vm742_vm1, %v735_v62, %v739_v4  ;;  %v746_v11 = vsel %vm742_vm1, %v739_v4, %v735_v62  ;;  %v811_v31 = vpop.permute.xlu2 %810 }
 0x25f   : > { %v760_v12 = vmul.f32 %v753_v53, %v745_v41  ;;  %v761_v13 = vmul.f32 %v753_v53, %v743_v10  ;;  %v762_v18 = vmul.f32 %v758_v59, %v746_v11  ;;  %v763_v19 = vmul.f32 %v758_v59, %v744_v43 }
 0x261   : > { %v769_v23 = vsel %vm1750_vm3, %v760_v12, 0.0  ;;  %v770_v24 = vsel %vm1754_vm4, %v761_v13, 0.0  ;;  %v771_v32 = vsel %vm1750_vm3, %v762_v18, 0.0  ;;  %v772_v33 = vsel %vm1754_vm4, %v763_v19, 0.0 }
 0x262   : > { %v785_v37 = vadd.f32 %v781_v21, %v769_v23  ;;  %v786_v38 = vadd.f32 %v782_v22, %v770_v24  ;;  %v787_v46 = vadd.f32 %v783_v20, %v771_v32  ;;  %v788_v47 = vadd.f32 %v784_v63, %v772_v33  ;;  %v942_v32 = vld.sshfl [vmem:[#allocation1] sm:$0xff pattern:$0x73625140]  ;;  %v943_v33 = vld.sshfl [vmem:[#allocation1 + $0x8] sm:$0xff pattern:$0x73625140] }
 0x263   : > { %1156 = vmatpush.msk.msrb.mxu2 %vm645_vm7, %v942_v32  ;;  %1158 = vmatpush.msk.msrb.mxu3 %vm645_vm7, %v943_v33 }
 0x265   : > { %v792_v42 = vpop.permute.xlu1 %791  ;;  %v790_v0 = vpop.permute.xlu0 %789 }
 0x266   : > { %v798_v26 = vsel %vm797_vm5, %v790_v0, %v794_v7  ;;  %v800_v27 = vsel %vm797_vm5, %v794_v7, %v790_v0 }
 0x26d   : > { %v807_v30 = vpop.permute.xlu1 %806  ;;  %v796_v36 = vpop.permute.xlu0 %795 }
 0x26e   : > { %v813_v34 = vmul.f32 %v807_v30, %v798_v26  ;;  %v814_v35 = vmul.f32 %v807_v30, %v800_v27  ;;  %v799_v39 = vsel %vm797_vm5, %v792_v42, %v796_v36  ;;  %v801_v40 = vsel %vm797_vm5, %v796_v36, %v792_v42 }
 0x26f   : > { %v815_v48 = vmul.f32 %v811_v31, %v799_v39  ;;  %v816_v49 = vmul.f32 %v811_v31, %v801_v40 }
 0x270   : > { %v822_v44 = vsel %vm1767_vm8, %v813_v34, 0.0  ;;  %v823_v45 = vsel %vm1771_vm9, %v814_v35, 0.0 }
 0x271   : > { %v826_v50 = vadd.f32 %v822_v44, %v785_v37  ;;  %v827_v51 = vadd.f32 %v823_v45, %v786_v38  ;;  %v824_v54 = vsel %vm1767_vm8, %v815_v48, 0.0  ;;  %v825_v55 = vsel %vm1771_vm9, %v816_v49, 0.0  ;;  %v845_v37 = vld [vmem:[%s1873_s10 + $0x8] sm:$0xff]  ;;  %v846_v38 = vld [vmem:[%s1874_s11] sm:$0xff] }
 0x272   : > { %v828_v56 = vadd.f32 %v824_v54, %v787_v46  ;;  %v829_v57 = vadd.f32 %v825_v55, %v788_v47  ;;  %1010 = vperm.xlu1 %1219, %v845_v37   ;;  %1019 = vperm.xlu2 %1220, %v846_v38  }
 0x273   : > { %vm831_vm10 = vcmp.ge.f32.partialorder %v826_v50, 0.0  ;;  %vm832_vm12 = vcmp.ge.f32.partialorder %v827_v51, 0.0  ;;  %v836_v52 = vmul.f32 %v835_v25, %v826_v50  ;;  %v837_v53 = vmul.f32 %v835_v25, %v827_v51 }
 0x274   : > { %vm833_vm13 = vcmp.ge.f32.partialorder %v828_v56, 0.0  ;;  %vm834_vm14 = vcmp.ge.f32.partialorder %v829_v57, 0.0  ;;  %v838_v60 = vmul.f32 %v835_v25, %v828_v56  ;;  %v839_v61 = vmul.f32 %v835_v25, %v829_v57 }
 0x275   : > { %v1789_v58 = vsel %vm831_vm10, %v826_v50, %v836_v52  ;;  %v1791_v59 = vsel %vm832_vm12, %v827_v51, %v837_v53 }
 0x276   : > { %v862_v62 = vmul.f32 %v1789_v58, %v1789_v58  ;;  %v863_v4 = vmul.f32 %v1791_v59, %v1791_v59  ;;  %v1797_v2 = vsel %vm833_vm13, %v828_v56, %v838_v60  ;;  %v1799_v5 = vsel %vm834_vm14, %v829_v57, %v839_v61  ;;  %v1006_v56 = vpop.permute.xlu0 %1005 }
 0x277   : > { %v848_v6 = vadd.f32 %v1797_v2, %v1789_v58  ;;  %v855_v7 = vadd.f32 %v1799_v5, %v1791_v59  ;;  %v864_v8 = vmul.f32 %v1797_v2, %v1797_v2  ;;  %v865_v9 = vmul.f32 %v1799_v5, %v1799_v5 }
 0x279   : > { %v849_v10 = vrot.slane %v848_v6, 4  ;;  %v856_v41 = vrot.slane %v855_v7, 4  ;;  %v866_v42 = vadd.f32 %v864_v8, %v862_v62  ;;  %v873_v0 = vadd.f32 %v865_v9, %v863_v4 }
 0x27b   : > { %v850_v1 = vadd.f32 %v849_v10, %v848_v6  ;;  %v867_v43 = vrot.slane %v866_v42, 4  ;;  %v857_v11 = vadd.f32 %v856_v41, %v855_v7  ;;  %v874_v12 = vrot.slane %v873_v0, 4 }
 0x27d   : > { %v851_v13 = vrot.slane %v850_v1, 2  ;;  %v868_v14 = vadd.f32 %v867_v43, %v866_v42  ;;  %v858_v15 = vrot.slane %v857_v11, 2  ;;  %v875_v16 = vadd.f32 %v874_v12, %v873_v0 }
 0x27f   : > { %v852_v17 = vadd.f32 %v851_v13, %v850_v1  ;;  %v869_v18 = vrot.slane %v868_v14, 2  ;;  %v859_v19 = vadd.f32 %v858_v15, %v857_v11  ;;  %v876_v20 = vrot.slane %v875_v16, 2 }
 0x281   : > { %v853_v63 = vrot.slane %v852_v17, 1  ;;  %v870_v21 = vadd.f32 %v869_v18, %v868_v14  ;;  %v860_v22 = vrot.slane %v859_v19, 1  ;;  %v877_v23 = vadd.f32 %v876_v20, %v875_v16  ;;  %v1025_v16 = vpop.permute.xlu0 %1024 }
 0x283   : > { %v871_v24 = vrot.slane %v870_v21, 1  ;;  %v878_v25 = vrot.slane %v877_v23, 1  ;;  %v854_v26 = vadd.f32 %v853_v63, %v852_v17  ;;  %v861_v28 = vadd.f32 %v860_v22, %v859_v19 }
 0x285   : > { %v872_v27 = vadd.f32 %v871_v24, %v870_v21  ;;  %v879_v29 = vadd.f32 %v878_v25, %v877_v23  ;;  %v1891_v23 = vld [vmem:[#allocation7_spill] sm:$0xff] }
 0x287   : > { %v880_v30 = vsel %vm575_vm6, %v854_v26, %v872_v27  ;;  %v881_v31 = vsel %vm575_vm6, %v861_v28, %v879_v29 }
 0x288   : > { %898 = vmatmul.f32.vlgmr.msra.gmra.mxu0 %v880_v30  ;;  %918 = vmatmul.f32.vlgmr.msra.gmra.mxu1 %v881_v31 }
 0x2cc   : > { %v1020_v11 = vpop.permute.xlu2 %1019 }
 0x2e4   : > { %v1011_v41 = vpop.permute.xlu1 %1010 }
 0x305   : > { %v899_v34 = vpop.f32.mrf.mxu0  ;;  %v919_v35 = vpop.f32.mrf.mxu1 }
 0x306   : > { %v920_v36 = vadd.f32 %v919_v35, %v899_v34 }
 0x308   : > { %v922_v39 = vmul.f32 0.00048828125, %v920_v36 }
 0x30a   : > { %v923_v40 = vmul.f32 %v922_v39, %v922_v39 }
 0x30c   : > { %v925_v44 = vrot.slane %v923_v40, 7 }
 0x30e   : > { %v927_v45 = vsub.f32 %v922_v39, %v925_v44 }
 0x310   : > { %v928_v48 = vmax.f32 %v927_v45, 0.0 }
 0x312   : > { %v929_v49 = vadd.f32 1e-08, %v928_v48 }
 0x314   : > { %1223 = vrsqrt.f32 %v929_v49  ;;  %vm936_vm15 = vweird.f32 %v929_v49 }
 0x31a   : > { %v1224_v50 = vpop.eup %1223 }
 0x31b   : > { %v931_v51 = vmul.f32 %v1224_v50, %v929_v49  ;;  %vm937_vm7 = vweird.f32 %v1224_v50 }
 0x31c   : > { %vm938_vm0 = vmor %vm936_vm15, %vm937_vm7 }
 0x31d   : > { %v932_v46 = vmul.f32 %v1224_v50, %v931_v51 }
 0x31f   : > { %v933_v47 = vmul.f32 0.5, %v932_v46 }
 0x321   : > { %v934_v54 = vsub.f32 1.5, %v933_v47 }
 0x323   : > { %v935_v55 = vmul.f32 %v1224_v50, %v934_v54 }
 0x325   : > { %v939_v52 = vsel %vm938_vm0, %v1224_v50, %v935_v55 }
 0x326   : > { %v940_v53 = vsel %vm575_vm6, %v922_v39, %v939_v52  ;;  %vm1035_vm6 = vcmask 130048  }
 0x327   : > { %1157 = vmatmul.msk.f32.vlgmr.msrb.gmra.mxu2 %vm641_vm11, %v940_v53  ;;  %1159 = vmatmul.msk.f32.vlgmr.msrb.gmra.mxu3 %vm641_vm11, %v940_v53 }
 0x3aa   : > { %v968_v57 = vpop.f32.mrf.mxu2  ;;  %v988_v60 = vpop.f32.mrf.mxu3 }
 0x3ab   : > { %v991_v61 = vperm.slane %v968_v57, 0  ;;  %v992_v62 = vperm.slane %v988_v60, 0  ;;  %v997_v4 = vperm.slane %v968_v57, 1  ;;  %v998_v6 = vperm.slane %v988_v60, 1 }
 0x3ad   : > { %v993_v7 = vsub.f32 %v1789_v58, %v991_v61  ;;  %v995_v8 = vsub.f32 %v1797_v2, %v991_v61  ;;  %v994_v9 = vsub.f32 %v1791_v59, %v992_v62  ;;  %v996_v10 = vsub.f32 %v1799_v5, %v992_v62  ;;  %v1031_v59 = vld [vmem:[%s1875_s12] sm:$0xff] }
 0x3ae   : > { %v1032_v20 = vpack.c.bf16 %v1031_v59, %v1031_v59 }
 0x3af   : > { %v999_v42 = vmul.f32 %v997_v4, %v993_v7  ;;  %v1000_v0 = vmul.f32 %v998_v6, %v994_v9  ;;  %v1001_v1 = vmul.f32 %v997_v4, %v995_v8  ;;  %v1002_v43 = vmul.f32 %v998_v6, %v996_v10 }
 0x3b1   : > { %v1015_v12 = vmul.f32 %v1011_v41, %v1001_v1  ;;  %v1016_v13 = vmul.f32 %v1011_v41, %v1002_v43  ;;  %v1013_v14 = vmul.f32 %v1006_v56, %v999_v42  ;;  %v1014_v15 = vmul.f32 %v1006_v56, %v1000_v0 }
 0x3b3   : > { %v1029_v58 = vadd.f32 %v1025_v16, %v1015_v12  ;;  %v1030_v17 = vadd.f32 %v1025_v16, %v1016_v13  ;;  %v1027_v2 = vadd.f32 %v1020_v11, %v1013_v14  ;;  %v1028_v18 = vadd.f32 %v1020_v11, %v1014_v15 }
 0x3b5   : > { %v1033_v5 = vpack.c.bf16 %v1029_v58, %v1027_v2  ;;  %v1034_v19 = vpack.c.bf16 %v1030_v17, %v1028_v18 }
 0x3b7   : > { %1046 = vmatpush.bf16.msra.mxu2 %v1033_v5  ;;  %1059 = vmatpush.bf16.msra.mxu3 %v1034_v19 }
 0x3ba   : > { %1160 = vmatmul.msk.bf16.vlgmr.msra.gmra.mxu2 %vm1035_vm6, %v1032_v20  ;;  %1161 = vmatmul.msk.bf16.vlgmr.msra.gmra.mxu3 %vm1035_vm6, %v1032_v20 }
 0x43d   : > { %v1048_v63 = vpop.f32.mrf.mxu2  ;;  %v1061_v21 = vpop.f32.mrf.mxu3 }
 0x43e   : > { %v1049_v22 = vadd.f32 %v1048_v63, %v1437_v3  ;;  %v1062_v24 = vadd.f32 %v1061_v21, %v1891_v23 }
 0x440   : > { %1065 = vst [vmem:[%s436_s18] sm:$0xff] %v1049_v22 }
 0x441   : > { %1066 = vst [vmem:[%s436_s18 + $0x8] sm:$0xff] %v1062_v24 }
 0x442   : > { %1252 = shalt.err (!%p1249_p3)
}
 0x443   : > { %1168 = dma.vmem_to_hbm [thread:$0]  (%p1408_p5), %s1082_s23, 256, %s1084_s24, %s1068_s5  }
 0x445   : > { %v1050_v3 = vpop.f32.mrf.mxu2  ;;  %v1063_v25 = vpop.f32.mrf.mxu3 }
 0x446 PF: > { %p1174_p4 = scmp.ge.s32.totalorder %s1287_s15, 2  ;;  %s1095_s22 = sand.u32 1, %s1275_s29  }
 0x447   : > { %s1096_s18 = scalar_lea.sflag [#allocation5], %s1095_s22 }
 0x448   : > { %p1171_p7 = pnand %p1174_p4, %p1412_p6 }
 0x44a   : > { %p1172_p8 = pneg %p1171_p7 }
 0x44c   : > { %1270 = dma.done.wait (%p1172_p8), %s1096_s18, 256  }
 0x44d   : > { %1272 = vsyncadd (%p1172_p8), %s1096_s18, 4294967040  ;;  %p25_p5 = scmp.ge.s32.totalorder %s1395_s16, 4   ;;  %s1892_s29 = smov %s1279_s30 }
 0x44e   : > { %s1893_s30 = smov %s1283_s14  ;;  %s1894_s14 = smov %s1406_s19 }
 0x44f   : > { %s1895_s15 = smov %s1395_s16  ;;  %27 = sbr.rel (!%p25_p5) target bundleno = 7 (0x7), region = 107 }
 0x454   :  { %1102 = vsyncpa [#allocation5], 1 }
 0x455   :  { %1104 = vsyncpa [#allocation5 + $0x1], 1 }

</bundles_post_ra>
